<compile_context>
chip_gen: v6e
topology: v6e:2x2x1
jax: 0.10.0
libtpu: 0.0.40
codegen_flags: <defaults>
</compile_context>

<pallas_src>
import functools

import jax
import jax.numpy as jnp
from jax.experimental import pallas as pl
from jax.experimental.pallas import tpu as pltpu


def _gate_kernel(x_ref, w_ref, noise_ref, nwdiag_ref, weights_ref, idx_ref, *, k):
    """One token tile: router logits -> noisy top-k -> sparse softmax."""
    # logits^T = gate_w (E, D) . x_tile (tile_n, D)^T  (MXU NT-form, f32 acc).
    logits_t = jax.lax.dot_general(
        w_ref[...], x_ref[...],
        dimension_numbers=(((1,), (1,)), ((), ())),
        preferred_element_type=jnp.float32)                      # (E, tile_n)

    # Scaled noise in the same transposed layout, without transposing the
    # noise tile: (diag(nw) . noise^T)[e, t] = nw[e] * noise[t, e].
    noise_t = jax.lax.dot_general(
        nwdiag_ref[...], noise_ref[...].astype(jnp.float32),
        dimension_numbers=(((1,), (1,)), ((), ())),
        preferred_element_type=jnp.float32)                      # (E, tile_n)

    noisy = logits_t + noise_t                                   # (E, tile_n)
    E = noisy.shape[0]
    row_ids = jax.lax.broadcasted_iota(jnp.int32, noisy.shape, 0)

    # Iterative top-k over the expert (sublane) axis; k is small and static,
    # so unroll in Python.  Ties resolve to the lowest expert index.
    # TODO(synk): for E >= ~32, chunk this epilogue over lane slices to bound
    # vreg pressure (only if ld/st slot_util shows spills are binding).
    work = noisy
    sparse = jnp.full_like(noisy, -jnp.inf)
    row_max = None
    idx_rows = []
    for step in range(k):
        m = jnp.max(work, axis=0, keepdims=True)                 # (1, tile_n)
        if step == 0:
            row_max = m            # global max == softmax row max; reuse below
        first = jnp.min(jnp.where(work == m, row_ids, E),
                        axis=0, keepdims=True)                   # (1, tile_n)
        onehot = row_ids == first                                # (E, tile_n)
        sparse = jnp.where(onehot, noisy, sparse)                # scatter top-k
        work = jnp.where(onehot, -jnp.inf, work)                 # remove winner
        idx_rows.append(first)

    idx_ref[...] = jnp.concatenate(idx_rows, axis=0).astype(idx_ref.dtype)

    # softmax over the sparse (-inf elsewhere) logits; exp(-inf) == 0.
    ex = jnp.exp(sparse - row_max)
    denom = jnp.sum(ex, axis=0, keepdims=True)
    inv = pl.reciprocal(denom, approx=True)        # EUP slot (nearly free)
    inv = inv * (2.0 - denom * inv)                # one Newton step -> ~f32
    weights_ref[...] = (ex * inv).astype(weights_ref.dtype)


def _round_up(a, b):
    return ((a + b - 1) // b) * b


def topk_moe_gate(x, gate_w, noise_weight, noise, *, k, max_tile_n=4096):
    """MoE router forward.

    x:            (B, T, D) activations (pass bf16 to halve HBM traffic).
    gate_w:       (E, D) gate weight (nn.Linear(n_embd, E, bias=False).weight).
    noise_weight: (E,)   learnable noise scale.
    noise:        (B, T, E) pre-sampled randn * noisy_std (natural layout).
    Returns: gated weights (B, T, E) f32, top-k indices (B, T, k) int32.
    """
    B, T, D = x.shape
    E, D_w = gate_w.shape
    assert D_w == D
    assert 1 <= k <= E, "k must be in [1, num_local_experts]"
    N = B * T

    x_flat = x.reshape(N, D)                 # streamed in its native dtype
    noise_flat = noise.reshape(N, E)         # natural (N, E), native dtype
    w = gate_w.astype(x_flat.dtype)          # tiny; match MXU operand dtype
    nw_diag = jnp.diag(noise_weight.astype(jnp.float32))        # (E, E)

    # ---- generation-aware VMEM budget (v5e/v6e: 128 MiB, v7x: 64 MiB / TC).
    try:
        vmem_cap = int(pltpu.get_tpu_info().vmem_capacity_bytes)
    except Exception:
        vmem_cap = 64 * 1024 * 1024          # conservative (v7x-safe) fallback
    if vmem_cap >= 96 * 1024 * 1024:         # v5e / v6e
        ws_budget, limit_cap = 56 << 20, 80 << 20
    else:                                    # v7x: leave per-TC headroom
        ws_budget, limit_cap = 36 << 20, 46 << 20

    xb = x_flat.dtype.itemsize
    nb = noise_flat.dtype.itemsize
    resident = 2 * E * D * w.dtype.itemsize + 2 * E * E * 4 + (1 << 20)
    per_tok = (2 * D * xb            # double-buffered x tile
               + 2 * E * nb          # double-buffered noise tile
               + 2 * (E + k) * 4     # double-buffered output tiles
               + 6 * E * 4)          # epilogue temporaries headroom

    if N <= 128:
        tile_n = N                   # single full-array block; tiny problem
    else:
        # Largest 128-multiple that fits the working-set budget ...
        tile_n = max(ws_budget - resident, 0) // per_tok // 128 * 128
        tile_n = int(max(128, min(tile_n, max_tile_n)))
        # ... never larger than the (128-rounded) token count, and keep at
        # least two tiles so v7x megacore ("parallel") engages both cores.
        tile_n = min(tile_n, _round_up(N, 128))
        tile_n = max(128, min(tile_n, _round_up(pl.cdiv(N, 2), 128)))

    # Ragged tail handled by Pallas boundary blocks (no jnp.pad copy of x):
    # out-of-range lanes compute on garbage and their writes are dropped.
    grid = (pl.cdiv(N, tile_n),)

    vmem_limit = int(min(max(resident + tile_n * per_tok + (8 << 20), 32 << 20),
                         limit_cap))

    weights_t, idx_t = pl.pallas_call(
        functools.partial(_gate_kernel, k=k),
        out_shape=(jax.ShapeDtypeStruct((E, N), jnp.float32),
                   jax.ShapeDtypeStruct((k, N), jnp.int32)),
        grid_spec=pltpu.PrefetchScalarGridSpec(
            num_scalar_prefetch=0,
            grid=grid,
            in_specs=[
                pl.BlockSpec((tile_n, D), lambda i: (i, 0)),   # x tile
                pl.BlockSpec((E, D), lambda i: (0, 0)),        # gate weight
                pl.BlockSpec((tile_n, E), lambda i: (i, 0)),   # noise (natural)
                pl.BlockSpec((E, E), lambda i: (0, 0)),        # diag(noise_w)
            ],
            out_specs=[
                pl.BlockSpec((E, tile_n), lambda i: (0, i)),   # weights^T
                pl.BlockSpec((k, tile_n), lambda i: (0, i)),   # indices^T
            ],
        ),
        compiler_params=pltpu.CompilerParams(
            dimension_semantics=("parallel",),   # megacore-shard token tiles
            vmem_limit_bytes=vmem_limit,
        ),
    )(x_flat, w, noise_flat, nw_diag)

    # TODO(synk): a fused MoE dispatch consumer could take the expert-major
    # (E, N) / (k, N) outputs directly and skip these small transposes.
    weights = weights_t.T.reshape(B, T, E)
    idx = idx_t.T.reshape(B, T, k)
    return weights, idx


def _reference(x, gate_w, noise_weight, noise, k):
    """Pure-JAX reference mirroring the PyTorch forward (f32 math)."""
    xf = x.astype(jnp.float32)
    wf = gate_w.astype(jnp.float32)
    logits = jnp.einsum("btd,ed->bte", xf, wf)
    logits_noisy = logits + noise.astype(jnp.float32) * (
        noise_weight.astype(jnp.float32)[None, None, :])
    _, topi = jax.lax.top_k(logits_noisy, k)
    onehot = jax.nn.one_hot(topi, logits_noisy.shape[-1], dtype=bool)
    sparse = jnp.where(onehot.any(axis=-2), logits_noisy, -jnp.inf)
    return jax.nn.softmax(sparse, axis=-1), topi


if __name__ == "__main__":
    # Small config consistent with the module's forward:
    B, T, D = 2, 8, 32          # batch, seq_len, n_embd
    E = 4                       # num_local_experts = len(local_expert_ids)
    K = 2                       # config.k
    noisy_std = 1.0

    key = jax.random.PRNGKey(0)
    kx, kw, kn, knw = jax.random.split(key, 4)

    # bf16 activations / weight exercise the halved-HBM-traffic streaming path.
    x = jax.random.normal(kx, (B, T, D), dtype=jnp.float32).astype(jnp.bfloat16)
    gate_w = (jax.random.normal(kw, (E, D), dtype=jnp.float32)
              * 0.02).astype(jnp.bfloat16)           # nn.Linear weight (E, D)
    # noise_weight is zeros at init in the module; use nonzero values so the
    # noise path is exercised.  Snap noise / noise_weight to bf16-representable
    # f32 values so the kernel-vs-reference check is independent of the MXU's
    # internal f32-matmul emulation precision (products are then exact).
    noise_weight = (jax.random.normal(knw, (E,), dtype=jnp.float32) * 0.1
                    ).astype(jnp.bfloat16).astype(jnp.float32)
    noise = (jax.random.normal(kn, (B, T, E), dtype=jnp.float32) * noisy_std
             ).astype(jnp.bfloat16).astype(jnp.float32)

    weights, idx = topk_moe_gate(x, gate_w, noise_weight, noise, k=K)
    jax.block_until_ready((weights, idx))

    ref_w, ref_i = _reference(x, gate_w, noise_weight, noise, K)
    assert weights.shape == (B, T, E) and idx.shape == (B, T, K)
    assert jnp.allclose(weights, ref_w, atol=5e-4, rtol=5e-4), (
        float(jnp.max(jnp.abs(weights - ref_w))))
    assert jnp.all(jnp.sort(idx, axis=-1)
                   == jnp.sort(ref_i.astype(jnp.int32), axis=-1))

    print("KERNEL_OK")
</pallas_src>

<mosaic_0001>
module attributes {stable_mosaic.version = 11 : i64} {
  func.func @_gate_kernel(%arg0: i32, %arg1: memref<16x32xbf16, #tpu.memory_space<vmem>>, %arg2: memref<4x32xbf16, #tpu.memory_space<vmem>>, %arg3: memref<16x4xf32, #tpu.memory_space<vmem>>, %arg4: memref<4x4xf32, #tpu.memory_space<vmem>>, %arg5: memref<4x16xf32, #tpu.memory_space<vmem>>, %arg6: memref<2x16xi32, #tpu.memory_space<vmem>>) attributes {dimension_semantics = [#tpu.dimension_semantics<parallel>], iteration_bounds = array<i64: 1>, scalar_prefetch = 0 : i64, scratch_operands = 0 : i64, tpu.core_type = #tpu.core_type<tc>, window_params = [{transform_indices = @transform_0, window_bounds = array<i64: 16, 32>}, {pipeline_mode = #tpu.pipeline_mode<synchronous>, transform_indices = @transform_1, window_bounds = array<i64: 4, 32>}, {transform_indices = @transform_2, window_bounds = array<i64: 16, 4>}, {pipeline_mode = #tpu.pipeline_mode<synchronous>, transform_indices = @transform_3, window_bounds = array<i64: 4, 4>}, {transform_indices = @transform_4, window_bounds = array<i64: 4, 16>}, {transform_indices = @transform_5, window_bounds = array<i64: 2, 16>}]} {
    %c0 = arith.constant 0 : index
    %c0_0 = arith.constant 0 : index
    %0 = vector.load %arg2[%c0, %c0_0] : memref<4x32xbf16, #tpu.memory_space<vmem>>, vector<4x32xbf16>
    %c0_1 = arith.constant 0 : index
    %c0_2 = arith.constant 0 : index
    %1 = vector.load %arg1[%c0_1, %c0_2] : memref<16x32xbf16, #tpu.memory_space<vmem>>, vector<16x32xbf16>
    %cst = arith.constant dense<0.000000e+00> : vector<4x16xf32>
    %2 = tpu.matmul %0, %1, %cst {dimension_numbers = #tpu.dot_dimension_numbers<[1], [1], [0], [0], [0, 0, 1, 0], [], []>} : vector<4x32xbf16>, vector<16x32xbf16>, vector<4x16xf32> -> vector<4x16xf32>
    %c0_3 = arith.constant 0 : index
    %c0_4 = arith.constant 0 : index
    %3 = vector.load %arg4[%c0_3, %c0_4] : memref<4x4xf32, #tpu.memory_space<vmem>>, vector<4x4xf32>
    %c0_5 = arith.constant 0 : index
    %c0_6 = arith.constant 0 : index
    %4 = vector.load %arg3[%c0_5, %c0_6] : memref<16x4xf32, #tpu.memory_space<vmem>>, vector<16x4xf32>
    %cst_7 = arith.constant dense<0.000000e+00> : vector<4x16xf32>
    %5 = tpu.matmul %3, %4, %cst_7 {dimension_numbers = #tpu.dot_dimension_numbers<[1], [1], [0], [0], [0, 0, 1, 0], [], []>} : vector<4x4xf32>, vector<16x4xf32>, vector<4x16xf32> -> vector<4x16xf32>
    %6 = arith.addf %2, %5 : vector<4x16xf32>
    %7 = tpu.iota {dimensions = array<i32: 0>} : vector<4x16xi32>
    %cst_8 = arith.constant 0xFF800000 : f32
    %8 = vector.broadcast %cst_8 : f32 to vector<4x16xf32>
    %cst_9 = arith.constant dense<0xFF800000> : vector<16xf32>
    %9 = vector.multi_reduction <maximumf>, %6, %cst_9 [0] : vector<4x16xf32> to vector<16xf32>
    %10 = vector.shape_cast %9 : vector<16xf32> to vector<1x16xf32>
    %11 = vector.broadcast %10 : vector<1x16xf32> to vector<4x16xf32>
    %12 = arith.cmpf oeq, %6, %11 : vector<4x16xf32>
    %c4_i32 = arith.constant 4 : i32
    %13 = vector.broadcast %c4_i32 : i32 to vector<4x16xi32>
    %14 = arith.select %12, %7, %13 : vector<4x16xi1>, vector<4x16xi32>
    %cst_10 = arith.constant dense<2147483647> : vector<16xi32>
    %15 = vector.multi_reduction <minsi>, %14, %cst_10 [0] : vector<4x16xi32> to vector<16xi32>
    %16 = vector.shape_cast %15 : vector<16xi32> to vector<1x16xi32>
    %17 = vector.broadcast %16 : vector<1x16xi32> to vector<4x16xi32>
    %18 = arith.cmpi eq, %7, %17 : vector<4x16xi32>
    %19 = arith.select %18, %6, %8 : vector<4x16xi1>, vector<4x16xf32>
    %cst_11 = arith.constant 0xFF800000 : f32
    %20 = vector.broadcast %cst_11 : f32 to vector<4x16xf32>
    %21 = arith.select %18, %20, %6 : vector<4x16xi1>, vector<4x16xf32>
    %cst_12 = arith.constant dense<0xFF800000> : vector<16xf32>
    %22 = vector.multi_reduction <maximumf>, %21, %cst_12 [0] : vector<4x16xf32> to vector<16xf32>
    %23 = vector.shape_cast %22 : vector<16xf32> to vector<1x16xf32>
    %24 = vector.broadcast %23 : vector<1x16xf32> to vector<4x16xf32>
    %25 = arith.cmpf oeq, %21, %24 : vector<4x16xf32>
    %c4_i32_13 = arith.constant 4 : i32
    %26 = vector.broadcast %c4_i32_13 : i32 to vector<4x16xi32>
    %27 = arith.select %25, %7, %26 : vector<4x16xi1>, vector<4x16xi32>
    %cst_14 = arith.constant dense<2147483647> : vector<16xi32>
    %28 = vector.multi_reduction <minsi>, %27, %cst_14 [0] : vector<4x16xi32> to vector<16xi32>
    %29 = vector.shape_cast %28 : vector<16xi32> to vector<1x16xi32>
    %30 = vector.broadcast %29 : vector<1x16xi32> to vector<4x16xi32>
    %31 = arith.cmpi eq, %7, %30 : vector<4x16xi32>
    %32 = arith.select %31, %6, %19 : vector<4x16xi1>, vector<4x16xf32>
    %33 = tpu.concatenate %16, %29 in 0 : vector<1x16xi32>, vector<1x16xi32> -> vector<2x16xi32>
    %c0_15 = arith.constant 0 : index
    %c0_16 = arith.constant 0 : index
    %34 = vector.load %arg6[%c0_15, %c0_16] : memref<2x16xi32, #tpu.memory_space<vmem>>, vector<2x16xi32>
    tpu.vector_store %arg6[%c0_15, %c0_16], %33 {strides = array<i32>} : memref<2x16xi32, #tpu.memory_space<vmem>>, vector<2x16xi32>,
    %35 = vector.broadcast %10 : vector<1x16xf32> to vector<4x16xf32>
    %36 = arith.subf %32, %35 : vector<4x16xf32>
    %37 = math.exp %36 : vector<4x16xf32>
    %cst_17 = arith.constant dense<0.000000e+00> : vector<16xf32>
    %38 = vector.multi_reduction <add>, %37, %cst_17 [0] : vector<4x16xf32> to vector<16xf32>
    %39 = vector.shape_cast %38 : vector<16xf32> to vector<1x16xf32>
    %40 = tpu.reciprocal %39 {approx = true} : vector<1x16xf32> -> vector<1x16xf32>
    %41 = arith.mulf %39, %40 : vector<1x16xf32>
    %cst_18 = arith.constant 2.000000e+00 : f32
    %42 = vector.broadcast %cst_18 : f32 to vector<1x16xf32>
    %43 = arith.subf %42, %41 : vector<1x16xf32>
    %44 = arith.mulf %40, %43 : vector<1x16xf32>
    %45 = vector.broadcast %44 : vector<1x16xf32> to vector<4x16xf32>
    %46 = arith.mulf %37, %45 : vector<4x16xf32>
    %c0_19 = arith.constant 0 : index
    %c0_20 = arith.constant 0 : index
    %47 = vector.load %arg5[%c0_19, %c0_20] : memref<4x16xf32, #tpu.memory_space<vmem>>, vector<4x16xf32>
    tpu.vector_store %arg5[%c0_19, %c0_20], %46 {strides = array<i32>} : memref<4x16xf32, #tpu.memory_space<vmem>>, vector<4x16xf32>,
    return
  }
  func.func @transform_0(%arg0: i32) -> (i32, i32) {
    %c0_i32 = arith.constant 0 : i32
    %c0_i32_0 = arith.constant 0 : i32
    return %arg0, %c0_i32 : i32, i32
  }
  func.func @transform_1(%arg0: i32) -> (i32, i32) {
    %c0_i32 = arith.constant 0 : i32
    %c0_i32_0 = arith.constant 0 : i32
    %c0_i32_1 = arith.constant 0 : i32
    return %c0_i32, %c0_i32_0 : i32, i32
  }
  func.func @transform_2(%arg0: i32) -> (i32, i32) {
    %c0_i32 = arith.constant 0 : i32
    %c0_i32_0 = arith.constant 0 : i32
    return %arg0, %c0_i32 : i32, i32
  }
  func.func @transform_3(%arg0: i32) -> (i32, i32) {
    %c0_i32 = arith.constant 0 : i32
    %c0_i32_0 = arith.constant 0 : i32
    %c0_i32_1 = arith.constant 0 : i32
    return %c0_i32, %c0_i32_0 : i32, i32
  }
  func.func @transform_4(%arg0: i32) -> (i32, i32) {
    %c0_i32 = arith.constant 0 : i32
    %c0_i32_0 = arith.constant 0 : i32
    return %c0_i32, %arg0 : i32, i32
  }
  func.func @transform_5(%arg0: i32) -> (i32, i32) {
    %c0_i32 = arith.constant 0 : i32
    %c0_i32_0 = arith.constant 0 : i32
    return %c0_i32, %arg0 : i32, i32
  }
}

</mosaic_0001>

<bundles_post_ra>
// kernel: tpu_custom_call.1
= control target key start
LH: loop header
LB: loop body
LE: loop exit
PB: predicated region body
PF: predicated region fallthrough
CT: control target
= control target key end

     0   :  { %11 = vsyncpa [#allocation3], 0  ;;  %vm28_vm0 = vcmask 31744   ;;  %v330_v2 = vmov 0.0   ;;  %vm113_vm1 = vcmask 261120   ;;  %vm331_vm2 = vmmov 0   ;;  %s396_s0 = inlined_call_operand.vmem [shape: bf16[16,32], index: 0, kind: input, shape index: {}]   ;;  %s397_s1 = inlined_call_operand.vmem [shape: bf16[4,32], index: 1, kind: input, shape index: {}]   ;;  %s398_s2 = inlined_call_operand.vmem [shape: f32[16,4], index: 2, kind: input, shape index: {}]   ;;  %s399_s3 = inlined_call_operand.vmem [shape: f32[4,4], index: 3, kind: input, shape index: {}]   ;;  %s400_s4 = inlined_call_operand.hbm [shape: f32[4,16], index: 4, kind: output, shape index: {0}]   ;;  %s401_s5 = inlined_call_operand.hbm [shape: s32[2,16], index: 5, kind: output, shape index: {1}]  }
   0x1   :  { %v27_v0 = vld [vmem:[%s398_s2 + $0x8] sm:$0xff]  ;;  %v281_v1 = vld [vmem:[%s396_s0] sm:$0xff]   ;;  %264 = vmatprep.subr.mxu0 %v330_v2  ;;  %271 = vmatprep.subr.bf16.mxu1 %v330_v2 }
   0x2   :  { %265 = vmatpush3.xpose.msk.msra.mxu0 %vm28_vm0, %v27_v0  ;;  %v118_v3 = vsel %vm113_vm1, %v281_v1, 0  ;;  %268 = vmatprep.mubr.msk.f32.mxu0 %vm331_vm2, %v330_v2  ;;  %v26_v4 = vld [vmem:[%s398_s2] sm:$0xff] }
   0x3   :  { %272 = vmatpush3.bf16.xpose.msra.mxu1 %v118_v3  ;;  %266 = vmatprep.subr.mxu0 %v330_v2 }
   0x4   :  { %12 = vsyncpa [#allocation5], 0  ;;  %273 = vmatprep.mubr.msk.bf16.mxu1 %vm331_vm2, %v330_v2  ;;  %v25_v5 = vld [vmem:[%s399_s3] sm:$0xf]  ;;  %vm162_vm3 = vcmask 125952   ;;  %v160_v18 = vlaneseq  ;;  %vm206_vm12 = vcmask 1040384  }
   0x5   :  { %v22_v6 = vld [vmem:[%s397_s1] sm:$0x3]  ;;  %s332_s1 = smov [#allocation4]   ;;  %vm208_vm14 = vcmask 123904  }
   0x6   :  { %267 = vmatpush3.xpose.msk.msra.mxu0 %vm28_vm0, %v26_v4  ;;  %v161_v21 = vshrl.u32 %v160_v18, 7  ;;  %s242_s2 = sshll.u32 %s332_s1, 4  ;;  %s243_s2 = int_to_ptr.vmem [resolvable:$true] %s242_s2 }
   0x7   :  { %s286_s3 = scalar_lea.vmem %s243_s2, 32  ;;  %p291_p1 = scmp.lt.s32.totalorder %s243_s2, %s243_s2 }
   0x8   :  { %p287_p0 = scmp.ne.s32.totalorder %s243_s2, %s286_s3  ;;  %p292_p2 = scmp.lt.s32.totalorder %s286_s3, %s286_s3 }
   0x9   :  { %269 = vmatmul.mubr.msk.f32.vlgmr.msra.gmra.mxu0 %vm28_vm0, %v25_v5 }
   0xa   :  { %274 = vmatmul.mubr.msk.bf16.vlgmr.msra.gmra.mxu1 %vm113_vm1, %v22_v6  ;;  %p293_p3 = por %p292_p2, %p291_p1 }
   0xc   :  { %p294_p4 = pnand %p293_p3, %p287_p0 }
  0xc9   :  { %v104_v7 = vpop.f32.mrf.mxu0 }
  0xca   :  { %v154_v8 = vpop.f32.mrf.mxu1 }
  0xcb   :  { %v270_v9 = vpop.f32.mrf.mxu0  ;;  %v155_v10 = vadd.f32 %v154_v8, %v104_v7 }
  0xcc   :  { %v275_v11 = vpop.f32.mrf.mxu1 }
  0xcd   :  { %v163_v12 = vsel %vm162_vm3, %v155_v10, -inf }
  0xce   :  { %v157_v13 = vpop.f32.mrf.mxu1  ;;  %v164_v14 = vrot.slane %v163_v12, 4 }
  0xd0   :  { %v276_v15 = vpop.f32.mrf.mxu1  ;;  %v165_v16 = vmax.f32 %v163_v12, %v164_v14 }
  0xd2   :  { %v166_v17 = vrot.slane %v165_v16, 2 }
  0xd4   :  { %v167_v19 = vmax.f32 %v165_v16, %v166_v17 }
  0xd6   :  { %v168_v20 = vrot.slane %v167_v19, 1 }
  0xd8   :  { %v169_v22 = vmax.f32 %v167_v19, %v168_v20 }
  0xda   :  { %vm170_vm4 = vcmp.eq.f32.partialorder %v155_v10, %v169_v22 }
  0xdb   :  { %v171_v23 = vsel %vm170_vm4, %v161_v21, 4 }
  0xdc   :  { %v172_v24 = vsel %vm162_vm3, %v171_v23, 2147483647 }
  0xdd   :  { %v173_v25 = vrot.slane %v172_v24, 4 }
  0xdf   :  { %vm174_vm5 = vcmp.lt.s32.totalorder %v172_v24, %v173_v25 }
  0xe0   :  { %v175_v26 = vsel %vm174_vm5, %v172_v24, %v173_v25 }
  0xe1   :  { %v176_v27 = vrot.slane %v175_v26, 2 }
  0xe3   :  { %vm177_vm6 = vcmp.lt.s32.totalorder %v175_v26, %v176_v27 }
  0xe4   :  { %v178_v28 = vsel %vm177_vm6, %v175_v26, %v176_v27 }
  0xe5   :  { %v179_v29 = vrot.slane %v178_v28, 1 }
  0xe7   :  { %vm180_vm7 = vcmp.lt.s32.totalorder %v178_v28, %v179_v29 }
  0xe8   :  { %v181_v30 = vsel %vm180_vm7, %v178_v28, %v179_v29 }
  0xe9   :  { %vm182_vm8 = vcmp.eq.s32.totalorder %v161_v21, %v181_v30 }
  0xea   :  { %v184_v31 = vsel %vm182_vm8, -inf, %v155_v10  ;;  %v183_v47 = vsel %vm182_vm8, %v155_v10, -inf }
  0xeb   :  { %v185_v32 = vsel %vm162_vm3, %v184_v31, -inf }
  0xec   :  { %v186_v33 = vrot.slane %v185_v32, 4 }
  0xee   :  { %v187_v34 = vmax.f32 %v185_v32, %v186_v33 }
  0xf0   :  { %v188_v35 = vrot.slane %v187_v34, 2 }
  0xf2   :  { %v189_v36 = vmax.f32 %v187_v34, %v188_v35 }
  0xf4   :  { %v190_v37 = vrot.slane %v189_v36, 1 }
  0xf6   :  { %v191_v38 = vmax.f32 %v189_v36, %v190_v37 }
  0xf8   :  { %vm192_vm9 = vcmp.eq.f32.partialorder %v184_v31, %v191_v38 }
  0xf9   :  { %v193_v39 = vsel %vm192_vm9, %v161_v21, 4 }
  0xfa   :  { %v194_v40 = vsel %vm162_vm3, %v193_v39, 2147483647 }
  0xfb   :  { %v195_v41 = vrot.slane %v194_v40, 4 }
  0xfd   :  { %vm196_vm10 = vcmp.lt.s32.totalorder %v194_v40, %v195_v41 }
  0xfe   :  { %v197_v42 = vsel %vm196_vm10, %v194_v40, %v195_v41 }
  0xff   :  { %v198_v43 = vrot.slane %v197_v42, 2 }
 0x101   :  { %vm199_vm11 = vcmp.lt.s32.totalorder %v197_v42, %v198_v43 }
 0x102   :  { %v200_v44 = vsel %vm199_vm11, %v197_v42, %v198_v43 }
 0x103   :  { %v201_v45 = vrot.slane %v200_v44, 1 }
 0x105   :  { %vm202_vm13 = vcmp.lt.s32.totalorder %v200_v44, %v201_v45 }
 0x106   :  { %v203_v46 = vsel %vm202_vm13, %v200_v44, %v201_v45 }
 0x107   :  { %vm204_vm15 = vcmp.eq.s32.totalorder %v161_v21, %v203_v46  ;;  %v207_v48 = vsel %vm206_vm12, %v181_v30, %v203_v46 }
 0x108   :  { %v205_v49 = vsel %vm204_vm15, %v155_v10, %v183_v47  ;;  %209 = vst.msk [vmem:[#allocation4] sm:$0x3] %vm208_vm14, %v207_v48 }
 0x109   :  { %v210_v50 = vsub.f32 %v205_v49, %v169_v22 }
 0x10a   :  { %297 = shalt.err (!%p294_p4)
}
 0x10b   :  { %245 = dma.vmem_to_hbm [thread:$0]  %s243_s2, 32, %s401_s5, [#allocation5]   ;;  %v211_v51 = vmul.f32 1.442695, %v210_v50 }
 0x10c   :  { %s333_s29 = smov [#allocation2]  }
 0x10d   :  { %282 = vpow2.f32 %v211_v51  ;;  %s232_s30 = sshll.u32 %s333_s29, 4  ;;  %s233_s30 = int_to_ptr.vmem [resolvable:$true] %s232_s30 }
 0x10e   :  { %s306_s5 = scalar_lea.vmem %s233_s30, 64  ;;  %p311_p6 = scmp.lt.s32.totalorder %s233_s30, %s233_s30 }
 0x10f   :  { %p307_p5 = scmp.ne.s32.totalorder %s233_s30, %s306_s5  ;;  %p312_p7 = scmp.lt.s32.totalorder %s306_s5, %s306_s5 }
 0x111   :  { %p313_p8 = por %p312_p7, %p311_p6 }
 0x113   :  { %p314_p9 = pnand %p313_p8, %p307_p5 }
 0x11a   :  { %v283_v52 = vpop.eup %282 }
 0x11b   :  { %v213_v53 = vsel %vm162_vm3, %v283_v52, 0.0 }
 0x11c   :  { %v214_v54 = vrot.slane %v213_v53, 4 }
 0x11e   :  { %v215_v55 = vadd.f32 %v214_v54, %v213_v53 }
 0x120   :  { %v216_v56 = vrot.slane %v215_v55, 2 }
 0x122   :  { %v217_v57 = vadd.f32 %v216_v56, %v215_v55 }
 0x124   :  { %v218_v58 = vrot.slane %v217_v57, 1 }
 0x126   :  { %v219_v59 = vadd.f32 %v218_v58, %v217_v57 }
 0x128   :  { %284 = vrcp.f32 %v219_v59 }
 0x135   :  { %v285_v60 = vpop.eup %284 }
 0x136   :  { %v221_v61 = vmul.f32 %v285_v60, %v219_v59 }
 0x138   :  { %v222_v62 = vsub.f32 2.0, %v221_v61 }
 0x13a   :  { %v223_v63 = vmul.f32 %v285_v60, %v222_v62 }
 0x13c   :  { %v224_v0 = vmul.f32 %v283_v52, %v223_v63 }
 0x13e   :  { %225 = vst.msk [vmem:[#allocation2] sm:$0xf] %vm162_vm3, %v224_v0 }
 0x13f   :  { %317 = shalt.err (!%p314_p9)
}
 0x140   :  { %235 = dma.vmem_to_hbm [thread:$0]  %s233_s30, 64, %s400_s4, [#allocation3]  }
 0x141   :  { %326 = dma.done.wait [#allocation3], 64  }
 0x142   :  { %327 = vsyncadd [#allocation3], 4294967232 }
 0x143   :  { %328 = dma.done.wait [#allocation5], 32  }
 0x144   :  { %329 = vsyncadd [#allocation5], 4294967264 }
 0x145   :  { %252 = vsyncpa [#allocation3], 1 }
 0x146   :  { %253 = vsyncpa [#allocation5], 1 }

</bundles_post_ra>
